<compile_context>
chip_gen: v6e
topology: v6e:2x2x1
jax: 0.10.0
libtpu: 0.0.40
codegen_flags: <defaults>
</compile_context>

<pallas_src>
import functools
import math

import jax
import jax.numpy as jnp
from jax import lax
from jax.experimental import pallas as pl
from jax.experimental.pallas import tpu as pltpu

# Generation-aware VMEM budget: ~75% of physical VMEM (128 MiB on v5e/v6e,
# 64 MiB on v7x), with a conservative fallback if the query is unavailable.
try:
    _VMEM_CAP_BYTES = int(getattr(pltpu.get_tpu_info(), "vmem_capacity_bytes",
                                  64 * 1024 * 1024))
except Exception:
    _VMEM_CAP_BYTES = 64 * 1024 * 1024
_VMEM_LIMIT_BYTES = (3 * _VMEM_CAP_BYTES) // 4


def _pick_tile(dim, target, align):
    """Largest tile <= target (halving) that divides `dim`; else the full extent
    (full-extent blocks are always legal w.r.t. the (8,128) rule)."""
    if dim <= target:
        return dim
    t = target
    while t >= align:
        if dim % t == 0:
            return t
        t //= 2
    return dim


# ----------------------------- tiled linear kernel -------------------------- #

def _linear_kernel(x_ref, w_ref, b_ref, o_ref, acc_ref):
    k = pl.program_id(2)

    @pl.when(k == 0)
    def _():
        acc_ref[...] = jnp.zeros_like(acc_ref)

    # bf16 MXU operands, f32 accumulation.
    acc_ref[...] += jnp.dot(x_ref[...].astype(jnp.bfloat16),
                            w_ref[...].astype(jnp.bfloat16),
                            preferred_element_type=jnp.float32)

    # Bias add fused into the finalize branch (VPU work hidden under MXU).
    @pl.when(k == pl.num_programs(2) - 1)
    def _():
        o_ref[...] = (acc_ref[...] + b_ref[...]).astype(o_ref.dtype)


def pallas_linear(x, w, b, *, tm_target=512, tn_target=512, tk_target=512):
    """y = x @ w + b ; x:(M,K), w:(K,N), b:(N,) — tiled + pipelined."""
    M, K = x.shape
    K2, N = w.shape
    assert K == K2
    tm = _pick_tile(M, tm_target, 8)
    tn = _pick_tile(N, tn_target, 128)
    tk = _pick_tile(K, tk_target, 128)
    grid = (M // tm, N // tn, K // tk)
    return pl.pallas_call(
        _linear_kernel,
        out_shape=jax.ShapeDtypeStruct((M, N), x.dtype),
        grid_spec=pltpu.PrefetchScalarGridSpec(
            num_scalar_prefetch=0,
            grid=grid,
            in_specs=[
                pl.BlockSpec((tm, tk), lambda i, j, kk: (i, kk)),
                pl.BlockSpec((tk, tn), lambda i, j, kk: (kk, j)),
                pl.BlockSpec((1, tn), lambda i, j, kk: (0, j)),
            ],
            out_specs=pl.BlockSpec((tm, tn), lambda i, j, kk: (i, j)),
            scratch_shapes=[pltpu.VMEM((tm, tn), jnp.float32)],
        ),
        compiler_params=pltpu.CompilerParams(
            dimension_semantics=("parallel", "parallel", "arbitrary"),
            vmem_limit_bytes=_VMEM_LIMIT_BYTES),
    )(x, w, b.reshape(1, N))


# ------------------------- fused 3-output QKV kernel ------------------------ #

def _qkv_kernel(x_ref, wq_ref, wk_ref, wv_ref, bq_ref, bk_ref, bv_ref,
                q_ref, k_ref, v_ref, accq, acck, accv):
    kk = pl.program_id(2)

    @pl.when(kk == 0)
    def _():
        accq[...] = jnp.zeros_like(accq)
        acck[...] = jnp.zeros_like(acck)
        accv[...] = jnp.zeros_like(accv)

    x = x_ref[...].astype(jnp.bfloat16)        # one activation load, three matmuls
    accq[...] += jnp.dot(x, wq_ref[...].astype(jnp.bfloat16),
                         preferred_element_type=jnp.float32)
    acck[...] += jnp.dot(x, wk_ref[...].astype(jnp.bfloat16),
                         preferred_element_type=jnp.float32)
    accv[...] += jnp.dot(x, wv_ref[...].astype(jnp.bfloat16),
                         preferred_element_type=jnp.float32)

    @pl.when(kk == pl.num_programs(2) - 1)
    def _():
        q_ref[...] = (accq[...] + bq_ref[...]).astype(q_ref.dtype)
        k_ref[...] = (acck[...] + bk_ref[...]).astype(k_ref.dtype)
        v_ref[...] = (accv[...] + bv_ref[...]).astype(v_ref.dtype)


def pallas_qkv_projection(x, wq, wk, wv, bq, bk, bv,
                          *, tm_target=512, tn_target=512, tk_target=512):
    """Self-attention fast path: q, k, v = x @ w_i + b_i as three outputs."""
    M, K = x.shape
    N = wq.shape[1]
    tm = _pick_tile(M, tm_target, 8)
    tn = _pick_tile(N, tn_target, 128)
    tk = _pick_tile(K, tk_target, 128)
    grid = (M // tm, N // tn, K // tk)
    x_spec = pl.BlockSpec((tm, tk), lambda i, j, kk: (i, kk))
    w_spec = pl.BlockSpec((tk, tn), lambda i, j, kk: (kk, j))
    b_spec = pl.BlockSpec((1, tn), lambda i, j, kk: (0, j))
    o_spec = pl.BlockSpec((tm, tn), lambda i, j, kk: (i, j))
    out_sds = jax.ShapeDtypeStruct((M, N), x.dtype)
    return pl.pallas_call(
        _qkv_kernel,
        out_shape=[out_sds, out_sds, out_sds],
        grid_spec=pltpu.PrefetchScalarGridSpec(
            num_scalar_prefetch=0,
            grid=grid,
            in_specs=[x_spec, w_spec, w_spec, w_spec, b_spec, b_spec, b_spec],
            out_specs=[o_spec, o_spec, o_spec],
            scratch_shapes=[pltpu.VMEM((tm, tn), jnp.float32)] * 3,
        ),
        compiler_params=pltpu.CompilerParams(
            dimension_semantics=("parallel", "parallel", "arbitrary"),
            vmem_limit_bytes=_VMEM_LIMIT_BYTES),
    )(x, wq, wk, wv, bq.reshape(1, N), bk.reshape(1, N), bv.reshape(1, N))


# ----------------------- flash-style attention kernel ----------------------- #

def _flash_mha_kernel(q_ref, k_ref, v_ref, o_ref, m_sc, l_sc, acc_sc,
                      *, num_head, d_k, scale):
    kv = pl.program_id(1)

    @pl.when(kv == 0)
    def _():
        m_sc[...] = jnp.full_like(m_sc, -jnp.inf)
        l_sc[...] = jnp.zeros_like(l_sc)
        acc_sc[...] = jnp.zeros_like(acc_sc)

    # Fold 1/sqrt(d_k) into q once (tq*D muls), then bf16 operands for the MXU.
    q_all = (q_ref[...] * scale).astype(jnp.bfloat16)
    k_all = k_ref[...].astype(jnp.bfloat16)
    v_all = v_ref[...].astype(jnp.bfloat16)

    # Static head loop; every iteration writes its results back to VMEM scratch,
    # releasing registers (no ctx list + lane-axis concatenate).
    # Softmax math stays f32 (v5e has no bf16 VPU/EUP).
    for h in range(num_head):
        lo = h * d_k
        qh = q_all[:, lo:lo + d_k]
        kh = k_all[:, lo:lo + d_k]
        vh = v_all[:, lo:lo + d_k]
        # scores = qh @ kh^T: contract last axes directly (no materialized K^T).
        s = lax.dot_general(qh, kh, (((1,), (1,)), ((), ())),
                            preferred_element_type=jnp.float32)       # (tq, tkv)
        m_prev = m_sc[:, h:h + 1]
        m_new = jnp.maximum(m_prev, jnp.max(s, axis=-1, keepdims=True))
        alpha = jnp.exp(m_prev - m_new)
        p = jnp.exp(s - m_new)
        l_sc[:, h:h + 1] = alpha * l_sc[:, h:h + 1] + jnp.sum(p, axis=-1,
                                                              keepdims=True)
        acc_sc[:, lo:lo + d_k] = alpha * acc_sc[:, lo:lo + d_k] + jnp.dot(
            p.astype(jnp.bfloat16), vh, preferred_element_type=jnp.float32)
        m_sc[:, h:h + 1] = m_new

    @pl.when(kv == pl.num_programs(1) - 1)
    def _():
        inv = pl.reciprocal(l_sc[...], approx=True)     # EUP slot, nearly free
        for h in range(num_head):
            lo = h * d_k
            acc_sc[:, lo:lo + d_k] = acc_sc[:, lo:lo + d_k] * inv[:, h:h + 1]
        # Single lane-dense (tq, D) store (all heads packed along lanes).
        o_ref[...] = acc_sc[...].astype(o_ref.dtype)


def pallas_mha_attention(q, k, v, num_head, *, tq_target=256, tkv_target=256):
    """q: (B, Sq, D), k/v: (B, Skv, D) with heads packed along D -> ctx (B, Sq, D)."""
    B, Sq, D = q.shape
    _, Skv, _ = k.shape
    d_k = D // num_head
    scale = 1.0 / math.sqrt(d_k)
    tq = _pick_tile(Sq, tq_target, 8)
    tkv = _pick_tile(Skv, tkv_target, 8)
    nq = Sq // tq
    nkv = Skv // tkv
    # Fold (B, q-tiles) into one leading parallel axis (balances v7x's 2 TCs even
    # for odd/unit B); KV reduction axis last, "arbitrary".
    grid = (B * nq, nkv)

    q_spec = pl.BlockSpec((None, tq, D), lambda t, kv: (t // nq, t % nq, 0))
    kv_spec = pl.BlockSpec((None, tkv, D), lambda t, kv: (t // nq, kv, 0))
    o_spec = pl.BlockSpec((None, tq, D), lambda t, kv: (t // nq, t % nq, 0))

    kernel = functools.partial(_flash_mha_kernel, num_head=num_head, d_k=d_k,
                               scale=scale)
    return pl.pallas_call(
        kernel,
        out_shape=jax.ShapeDtypeStruct((B, Sq, D), q.dtype),
        grid_spec=pltpu.PrefetchScalarGridSpec(
            num_scalar_prefetch=0,
            grid=grid,
            in_specs=[q_spec, kv_spec, kv_spec],
            out_specs=o_spec,
            scratch_shapes=[
                pltpu.VMEM((tq, num_head), jnp.float32),   # running max  (per head)
                pltpu.VMEM((tq, num_head), jnp.float32),   # running sum  (per head)
                pltpu.VMEM((tq, D), jnp.float32),          # context accumulator
            ],
        ),
        compiler_params=pltpu.CompilerParams(
            dimension_semantics=("parallel", "arbitrary"),
            vmem_limit_bytes=_VMEM_LIMIT_BYTES),
    )(q, k, v)


# ------------------------------ module wrapper ------------------------------ #

def init_params(key, d_model):
    """Deterministic init mimicking nn.Linear (uniform(-1/sqrt(in), 1/sqrt(in)))."""
    bound = 1.0 / math.sqrt(d_model)
    names = ["q", "k", "v", "out"]   # 3 input projections (n_linear=4: 4th unused) + output
    params = {}
    for n in names:
        key, kw, kb = jax.random.split(key, 3)
        params[f"w_{n}"] = jax.random.uniform(
            kw, (d_model, d_model), jnp.float32, -bound, bound)
        params[f"b_{n}"] = jax.random.uniform(
            kb, (d_model,), jnp.float32, -bound, bound)
    return params


def multi_headed_attention(params, query, key, value, num_head, *,
                           self_attention=None):
    B, Sq, D = query.shape
    Skv = key.shape[1]

    if self_attention is None:
        # NOTE: under jax.jit the three args are distinct tracers and this
        # identity check never fires — pass self_attention=True explicitly in
        # jitted deployments to keep the fused-QKV path.
        self_attention = (query is key) and (query is value)

    if self_attention:
        q2, k2, v2 = pallas_qkv_projection(
            query.reshape(B * Sq, D),
            params["w_q"], params["w_k"], params["w_v"],
            params["b_q"], params["b_k"], params["b_v"])
        q = q2.reshape(B, Sq, D)
        k = k2.reshape(B, Sq, D)
        v = v2.reshape(B, Sq, D)
    else:
        q = pallas_linear(query.reshape(B * Sq, D), params["w_q"],
                          params["b_q"]).reshape(B, Sq, D)
        k = pallas_linear(key.reshape(B * Skv, D), params["w_k"],
                          params["b_k"]).reshape(B, Skv, D)
        v = pallas_linear(value.reshape(B * Skv, D), params["w_v"],
                          params["b_v"]).reshape(B, Skv, D)

    # Head split/merge happens inside the kernel -> no transposes, (B,S,D) in/out.
    ctx = pallas_mha_attention(q, k, v, num_head)                    # (B, Sq, D)

    out = pallas_linear(ctx.reshape(B * Sq, D), params["w_out"], params["b_out"])
    return out.reshape(B, Sq, D)


# ------------------------------ reference check ----------------------------- #

def reference(params, query, key, value, num_head):
    B, Sq, D = query.shape
    d_k = D // num_head

    def lin(x, w, b):
        return x @ w + b

    def split(x):
        b, s, _ = x.shape
        return x.reshape(b, s, num_head, d_k).transpose(0, 2, 1, 3)

    q = split(lin(query, params["w_q"], params["b_q"]))
    k = split(lin(key, params["w_k"], params["b_k"]))
    v = split(lin(value, params["w_v"], params["b_v"]))
    scores = jnp.einsum("bhqd,bhkd->bhqk", q, k) / math.sqrt(d_k)
    p = jax.nn.softmax(scores, axis=-1)
    ctx = jnp.einsum("bhqk,bhkd->bhqd", p, v)
    ctx = ctx.transpose(0, 2, 1, 3).reshape(B, Sq, D)
    return lin(ctx, params["w_out"], params["b_out"])


# ----------------------------------- main ----------------------------------- #

if __name__ == "__main__":
    # bf16 MXU operands with f32 accumulation -> compare to the f32 reference
    # with a bf16-appropriate tolerance.
    ATOL = RTOL = 5e-2

    # Small shapes consistent with the module.
    B, S, d_model, num_head = 2, 8, 32, 4

    root = jax.random.PRNGKey(0)
    kp, kx, kq, kk, kv = jax.random.split(root, 5)
    params = init_params(kp, d_model)

    # Self-attention (fused 3-output QKV path).
    x = jax.random.normal(kx, (B, S, d_model), jnp.float32)
    out_self = jax.block_until_ready(
        multi_headed_attention(params, x, x, x, num_head, self_attention=True))
    ref_self = reference(params, x, x, x, num_head)
    assert out_self.shape == (B, S, d_model)
    assert jnp.allclose(out_self, ref_self, atol=ATOL, rtol=RTOL), \
        "self-attention mismatch vs reference"

    # Cross-attention (separate-projection path).
    q_in = jax.random.normal(kq, (B, S, d_model), jnp.float32)
    k_in = jax.random.normal(kk, (B, S, d_model), jnp.float32)
    v_in = jax.random.normal(kv, (B, S, d_model), jnp.float32)
    out_cross = jax.block_until_ready(
        multi_headed_attention(params, q_in, k_in, v_in, num_head,
                               self_attention=False))
    ref_cross = reference(params, q_in, k_in, v_in, num_head)
    assert jnp.allclose(out_cross, ref_cross, atol=ATOL, rtol=RTOL), \
        "cross-attention mismatch vs reference"

    # Larger shapes: exercises M-tiled linears and the multi-step flash KV loop
    # (online softmax across KV tiles), still quick to run.
    B2, S2, D2, H2 = 2, 512, 256, 4
    params2 = init_params(jax.random.PRNGKey(1), D2)
    x2 = jax.random.normal(jax.random.PRNGKey(2), (B2, S2, D2), jnp.float32)
    out_big = jax.block_until_ready(
        multi_headed_attention(params2, x2, x2, x2, H2, self_attention=True))
    ref_big = reference(params2, x2, x2, x2, H2)
    assert jnp.allclose(out_big, ref_big, atol=ATOL, rtol=RTOL), \
        "tiled self-attention mismatch vs reference"

    print("KERNEL_OK")
</pallas_src>

<mosaic_0001>
module attributes {stable_mosaic.version = 11 : i64} {
  func.func @_qkv_kernel(%arg0: i32, %arg1: i32, %arg2: i32, %arg3: memref<16x32xf32, #tpu.memory_space<vmem>>, %arg4: memref<32x32xf32, #tpu.memory_space<vmem>>, %arg5: memref<32x32xf32, #tpu.memory_space<vmem>>, %arg6: memref<32x32xf32, #tpu.memory_space<vmem>>, %arg7: memref<1x32xf32, #tpu.memory_space<vmem>>, %arg8: memref<1x32xf32, #tpu.memory_space<vmem>>, %arg9: memref<1x32xf32, #tpu.memory_space<vmem>>, %arg10: memref<16x32xf32, #tpu.memory_space<vmem>>, %arg11: memref<16x32xf32, #tpu.memory_space<vmem>>, %arg12: memref<16x32xf32, #tpu.memory_space<vmem>>, %arg13: memref<16x32xf32, #tpu.memory_space<vmem>>, %arg14: memref<16x32xf32, #tpu.memory_space<vmem>>, %arg15: memref<16x32xf32, #tpu.memory_space<vmem>>) attributes {dimension_semantics = [#tpu.dimension_semantics<parallel>, #tpu.dimension_semantics<parallel>, #tpu.dimension_semantics<arbitrary>], iteration_bounds = array<i64: 1, 1, 1>, scalar_prefetch = 0 : i64, scratch_operands = 3 : i64, tpu.core_type = #tpu.core_type<tc>, window_params = [{transform_indices = @transform_0, window_bounds = array<i64: 16, 32>}, {transform_indices = @transform_1, window_bounds = array<i64: 32, 32>}, {transform_indices = @transform_2, window_bounds = array<i64: 32, 32>}, {transform_indices = @transform_3, window_bounds = array<i64: 32, 32>}, {transform_indices = @transform_4, window_bounds = array<i64: 1, 32>}, {transform_indices = @transform_5, window_bounds = array<i64: 1, 32>}, {transform_indices = @transform_6, window_bounds = array<i64: 1, 32>}, {transform_indices = @transform_7, window_bounds = array<i64: 16, 32>}, {transform_indices = @transform_8, window_bounds = array<i64: 16, 32>}, {transform_indices = @transform_9, window_bounds = array<i64: 16, 32>}]} {
    %c0_i32 = arith.constant 0 : i32
    %0 = arith.cmpi eq, %arg2, %c0_i32 : i32
    %1 = arith.extui %0 : i1 to i32
    %c0_i32_0 = arith.constant 0 : i32
    %2 = arith.cmpi ne, %1, %c0_i32_0 : i32
    scf.if %2 {
      %cst_24 = arith.constant 0.000000e+00 : f32
      %26 = vector.broadcast %cst_24 : f32 to vector<16x32xf32>
      %c0_25 = arith.constant 0 : index
      %c0_26 = arith.constant 0 : index
      %27 = vector.load %arg13[%c0_25, %c0_26] : memref<16x32xf32, #tpu.memory_space<vmem>>, vector<16x32xf32>
      tpu.vector_store %arg13[%c0_25, %c0_26], %26 {strides = array<i32>} : memref<16x32xf32, #tpu.memory_space<vmem>>, vector<16x32xf32>,
      %cst_27 = arith.constant 0.000000e+00 : f32
      %28 = vector.broadcast %cst_27 : f32 to vector<16x32xf32>
      %c0_28 = arith.constant 0 : index
      %c0_29 = arith.constant 0 : index
      %29 = vector.load %arg14[%c0_28, %c0_29] : memref<16x32xf32, #tpu.memory_space<vmem>>, vector<16x32xf32>
      tpu.vector_store %arg14[%c0_28, %c0_29], %28 {strides = array<i32>} : memref<16x32xf32, #tpu.memory_space<vmem>>, vector<16x32xf32>,
      %cst_30 = arith.constant 0.000000e+00 : f32
      %30 = vector.broadcast %cst_30 : f32 to vector<16x32xf32>
      %c0_31 = arith.constant 0 : index
      %c0_32 = arith.constant 0 : index
      %31 = vector.load %arg15[%c0_31, %c0_32] : memref<16x32xf32, #tpu.memory_space<vmem>>, vector<16x32xf32>
      tpu.vector_store %arg15[%c0_31, %c0_32], %30 {strides = array<i32>} : memref<16x32xf32, #tpu.memory_space<vmem>>, vector<16x32xf32>,
    } else {
    }
    %c0 = arith.constant 0 : index
    %c0_1 = arith.constant 0 : index
    %3 = vector.load %arg3[%c0, %c0_1] : memref<16x32xf32, #tpu.memory_space<vmem>>, vector<16x32xf32>
    %4 = arith.truncf %3 : vector<16x32xf32> to vector<16x32xbf16>
    %c0_2 = arith.constant 0 : index
    %c0_3 = arith.constant 0 : index
    %5 = vector.load %arg13[%c0_2, %c0_3] : memref<16x32xf32, #tpu.memory_space<vmem>>, vector<16x32xf32>
    %c0_4 = arith.constant 0 : index
    %c0_5 = arith.constant 0 : index
    %6 = vector.load %arg4[%c0_4, %c0_5] : memref<32x32xf32, #tpu.memory_space<vmem>>, vector<32x32xf32>
    %7 = arith.truncf %6 : vector<32x32xf32> to vector<32x32xbf16>
    %cst = arith.constant dense<0.000000e+00> : vector<16x32xf32>
    %8 = tpu.matmul %4, %7, %cst {dimension_numbers = #tpu.dot_dimension_numbers<[1], [0], [0], [1], [0, 0, 1, 1], [], []>} : vector<16x32xbf16>, vector<32x32xbf16>, vector<16x32xf32> -> vector<16x32xf32>
    %9 = arith.addf %5, %8 : vector<16x32xf32>
    %c0_6 = arith.constant 0 : index
    %c0_7 = arith.constant 0 : index
    %10 = vector.load %arg13[%c0_6, %c0_7] : memref<16x32xf32, #tpu.memory_space<vmem>>, vector<16x32xf32>
    tpu.vector_store %arg13[%c0_6, %c0_7], %9 {strides = array<i32>} : memref<16x32xf32, #tpu.memory_space<vmem>>, vector<16x32xf32>,
    %c0_8 = arith.constant 0 : index
    %c0_9 = arith.constant 0 : index
    %11 = vector.load %arg14[%c0_8, %c0_9] : memref<16x32xf32, #tpu.memory_space<vmem>>, vector<16x32xf32>
    %c0_10 = arith.constant 0 : index
    %c0_11 = arith.constant 0 : index
    %12 = vector.load %arg5[%c0_10, %c0_11] : memref<32x32xf32, #tpu.memory_space<vmem>>, vector<32x32xf32>
    %13 = arith.truncf %12 : vector<32x32xf32> to vector<32x32xbf16>
    %cst_12 = arith.constant dense<0.000000e+00> : vector<16x32xf32>
    %14 = tpu.matmul %4, %13, %cst_12 {dimension_numbers = #tpu.dot_dimension_numbers<[1], [0], [0], [1], [0, 0, 1, 1], [], []>} : vector<16x32xbf16>, vector<32x32xbf16>, vector<16x32xf32> -> vector<16x32xf32>
    %15 = arith.addf %11, %14 : vector<16x32xf32>
    %c0_13 = arith.constant 0 : index
    %c0_14 = arith.constant 0 : index
    %16 = vector.load %arg14[%c0_13, %c0_14] : memref<16x32xf32, #tpu.memory_space<vmem>>, vector<16x32xf32>
    tpu.vector_store %arg14[%c0_13, %c0_14], %15 {strides = array<i32>} : memref<16x32xf32, #tpu.memory_space<vmem>>, vector<16x32xf32>,
    %c0_15 = arith.constant 0 : index
    %c0_16 = arith.constant 0 : index
    %17 = vector.load %arg15[%c0_15, %c0_16] : memref<16x32xf32, #tpu.memory_space<vmem>>, vector<16x32xf32>
    %c0_17 = arith.constant 0 : index
    %c0_18 = arith.constant 0 : index
    %18 = vector.load %arg6[%c0_17, %c0_18] : memref<32x32xf32, #tpu.memory_space<vmem>>, vector<32x32xf32>
    %19 = arith.truncf %18 : vector<32x32xf32> to vector<32x32xbf16>
    %cst_19 = arith.constant dense<0.000000e+00> : vector<16x32xf32>
    %20 = tpu.matmul %4, %19, %cst_19 {dimension_numbers = #tpu.dot_dimension_numbers<[1], [0], [0], [1], [0, 0, 1, 1], [], []>} : vector<16x32xbf16>, vector<32x32xbf16>, vector<16x32xf32> -> vector<16x32xf32>
    %21 = arith.addf %17, %20 : vector<16x32xf32>
    %c0_20 = arith.constant 0 : index
    %c0_21 = arith.constant 0 : index
    %22 = vector.load %arg15[%c0_20, %c0_21] : memref<16x32xf32, #tpu.memory_space<vmem>>, vector<16x32xf32>
    tpu.vector_store %arg15[%c0_20, %c0_21], %21 {strides = array<i32>} : memref<16x32xf32, #tpu.memory_space<vmem>>, vector<16x32xf32>,
    %c0_i32_22 = arith.constant 0 : i32
    %23 = arith.cmpi eq, %arg2, %c0_i32_22 : i32
    %24 = arith.extui %23 : i1 to i32
    %c0_i32_23 = arith.constant 0 : i32
    %25 = arith.cmpi ne, %24, %c0_i32_23 : i32
    scf.if %25 {
      %c0_24 = arith.constant 0 : index
      %c0_25 = arith.constant 0 : index
      %26 = vector.load %arg13[%c0_24, %c0_25] : memref<16x32xf32, #tpu.memory_space<vmem>>, vector<16x32xf32>
      %c0_26 = arith.constant 0 : index
      %c0_27 = arith.constant 0 : index
      %27 = vector.load %arg7[%c0_26, %c0_27] : memref<1x32xf32, #tpu.memory_space<vmem>>, vector<1x32xf32>
      %28 = vector.broadcast %27 : vector<1x32xf32> to vector<16x32xf32>
      %29 = arith.addf %26, %28 : vector<16x32xf32>
      %c0_28 = arith.constant 0 : index
      %c0_29 = arith.constant 0 : index
      %30 = vector.load %arg10[%c0_28, %c0_29] : memref<16x32xf32, #tpu.memory_space<vmem>>, vector<16x32xf32>
      tpu.vector_store %arg10[%c0_28, %c0_29], %29 {strides = array<i32>} : memref<16x32xf32, #tpu.memory_space<vmem>>, vector<16x32xf32>,
      %c0_30 = arith.constant 0 : index
      %c0_31 = arith.constant 0 : index
      %31 = vector.load %arg14[%c0_30, %c0_31] : memref<16x32xf32, #tpu.memory_space<vmem>>, vector<16x32xf32>
      %c0_32 = arith.constant 0 : index
      %c0_33 = arith.constant 0 : index
      %32 = vector.load %arg8[%c0_32, %c0_33] : memref<1x32xf32, #tpu.memory_space<vmem>>, vector<1x32xf32>
      %33 = vector.broadcast %32 : vector<1x32xf32> to vector<16x32xf32>
      %34 = arith.addf %31, %33 : vector<16x32xf32>
      %c0_34 = arith.constant 0 : index
      %c0_35 = arith.constant 0 : index
      %35 = vector.load %arg11[%c0_34, %c0_35] : memref<16x32xf32, #tpu.memory_space<vmem>>, vector<16x32xf32>
      tpu.vector_store %arg11[%c0_34, %c0_35], %34 {strides = array<i32>} : memref<16x32xf32, #tpu.memory_space<vmem>>, vector<16x32xf32>,
      %c0_36 = arith.constant 0 : index
      %c0_37 = arith.constant 0 : index
      %36 = vector.load %arg15[%c0_36, %c0_37] : memref<16x32xf32, #tpu.memory_space<vmem>>, vector<16x32xf32>
      %c0_38 = arith.constant 0 : index
      %c0_39 = arith.constant 0 : index
      %37 = vector.load %arg9[%c0_38, %c0_39] : memref<1x32xf32, #tpu.memory_space<vmem>>, vector<1x32xf32>
      %38 = vector.broadcast %37 : vector<1x32xf32> to vector<16x32xf32>
      %39 = arith.addf %36, %38 : vector<16x32xf32>
      %c0_40 = arith.constant 0 : index
      %c0_41 = arith.constant 0 : index
      %40 = vector.load %arg12[%c0_40, %c0_41] : memref<16x32xf32, #tpu.memory_space<vmem>>, vector<16x32xf32>
      tpu.vector_store %arg12[%c0_40, %c0_41], %39 {strides = array<i32>} : memref<16x32xf32, #tpu.memory_space<vmem>>, vector<16x32xf32>,
    } else {
    }
    return
  }
  func.func @transform_0(%arg0: i32, %arg1: i32, %arg2: i32) -> (i32, i32) {
    %c0_i32 = arith.constant 0 : i32
    return %arg0, %arg2 : i32, i32
  }
  func.func @transform_1(%arg0: i32, %arg1: i32, %arg2: i32) -> (i32, i32) {
    %c0_i32 = arith.constant 0 : i32
    return %arg2, %arg1 : i32, i32
  }
  func.func @transform_2(%arg0: i32, %arg1: i32, %arg2: i32) -> (i32, i32) {
    %c0_i32 = arith.constant 0 : i32
    return %arg2, %arg1 : i32, i32
  }
  func.func @transform_3(%arg0: i32, %arg1: i32, %arg2: i32) -> (i32, i32) {
    %c0_i32 = arith.constant 0 : i32
    return %arg2, %arg1 : i32, i32
  }
  func.func @transform_4(%arg0: i32, %arg1: i32, %arg2: i32) -> (i32, i32) {
    %c0_i32 = arith.constant 0 : i32
    %c0_i32_0 = arith.constant 0 : i32
    return %c0_i32, %arg1 : i32, i32
  }
  func.func @transform_5(%arg0: i32, %arg1: i32, %arg2: i32) -> (i32, i32) {
    %c0_i32 = arith.constant 0 : i32
    %c0_i32_0 = arith.constant 0 : i32
    return %c0_i32, %arg1 : i32, i32
  }
  func.func @transform_6(%arg0: i32, %arg1: i32, %arg2: i32) -> (i32, i32) {
    %c0_i32 = arith.constant 0 : i32
    %c0_i32_0 = arith.constant 0 : i32
    return %c0_i32, %arg1 : i32, i32
  }
  func.func @transform_7(%arg0: i32, %arg1: i32, %arg2: i32) -> (i32, i32) {
    %c0_i32 = arith.constant 0 : i32
    return %arg0, %arg1 : i32, i32
  }
  func.func @transform_8(%arg0: i32, %arg1: i32, %arg2: i32) -> (i32, i32) {
    %c0_i32 = arith.constant 0 : i32
    return %arg0, %arg1 : i32, i32
  }
  func.func @transform_9(%arg0: i32, %arg1: i32, %arg2: i32) -> (i32, i32) {
    %c0_i32 = arith.constant 0 : i32
    return %arg0, %arg1 : i32, i32
  }
}

</mosaic_0001>

<bundles_post_ra>
// kernel: tpu_custom_call.1
= control target key start
LH: loop header
LB: loop body
LE: loop exit
PB: predicated region body
PF: predicated region fallthrough
CT: control target
= control target key end

     0   :  { %15 = vsyncpa [#allocation6], 0  ;;  %s692_s0 = inlined_call_operand.hbm [shape: f32[16,32], index: 0, kind: input, shape index: {}]   ;;  %s693_s1 = inlined_call_operand.hbm [shape: f32[32,32], index: 1, kind: input, shape index: {}]   ;;  %s694_s2 = inlined_call_operand.hbm [shape: f32[32,32], index: 2, kind: input, shape index: {}]   ;;  %s695_s3 = inlined_call_operand.hbm [shape: f32[32,32], index: 3, kind: input, shape index: {}]   ;;  %s696_s4 = inlined_call_operand.vmem [shape: f32[1,32], index: 4, kind: input, shape index: {}]   ;;  %s697_s5 = inlined_call_operand.vmem [shape: f32[1,32], index: 5, kind: input, shape index: {}]   ;;  %s698_s6 = inlined_call_operand.vmem [shape: f32[1,32], index: 6, kind: input, shape index: {}]   ;;  %s699_s7 = inlined_call_operand.hbm [shape: f32[16,32], index: 7, kind: output, shape index: {0}]   ;;  %s700_s8 = inlined_call_operand.hbm [shape: f32[16,32], index: 8, kind: output, shape index: {1}]   ;;  %s701_s9 = inlined_call_operand.hbm [shape: f32[16,32], index: 9, kind: output, shape index: {2}]  }
   0x1   :  { %16 = vsyncpa [#allocation9], 0 }
   0x2   :  { %17 = vsyncpa [#allocation12], 0 }
   0x3   :  { %18 = vsyncpa [#allocation7], 0 }
   0x4   :  { %19 = vsyncpa [#allocation15], 0  ;;  %s556_s30 = smov [#allocation8]   ;;  %s557_s11 = smov [#allocation5]  }
   0x5   :  { %s37_s10 = sshll.u32 %s556_s30, 4  ;;  %s25_s12 = sshll.u32 %s557_s11, 4  ;;  %s38_s10 = int_to_ptr.vmem [resolvable:$true] %s37_s10  ;;  %s26_s12 = int_to_ptr.vmem [resolvable:$true] %s25_s12 }
   0x6   :  { %s414_s13 = scalar_lea.vmem %s38_s10, 512  ;;  %p419_p1 = scmp.lt.s32.totalorder %s38_s10, %s38_s10 }
   0x7   :  { %p415_p0 = scmp.ne.s32.totalorder %s38_s10, %s414_s13  ;;  %p420_p2 = scmp.lt.s32.totalorder %s414_s13, %s414_s13 }
   0x9   :  { %p421_p3 = por %p420_p2, %p419_p1 }
   0xb   :  { %p422_p4 = pnand %p421_p3, %p415_p0 }
   0xd   :  { %425 = shalt.err (!%p422_p4)
}
   0xe   :  { %s558_s14 = smov 128   ;;  %s559_s15 = smov 8  }
   0xf   :  { %43 = dma.hbm_to_vmem [thread:$0]  %s693_s1, 512, %s38_s10, [#allocation9], %s558_s14, %s558_s14, %s559_s15  }
  0x10   :  { %s434_s18 = scalar_lea.vmem %s26_s12, 256  ;;  %p439_p6 = scmp.lt.s32.totalorder %s26_s12, %s26_s12 }
  0x11   :  { %p435_p5 = scmp.ne.s32.totalorder %s26_s12, %s434_s18  ;;  %p440_p7 = scmp.lt.s32.totalorder %s434_s18, %s434_s18 }
  0x13   :  { %p441_p8 = por %p440_p7, %p439_p6 }
  0x15   :  { %p442_p9 = pnand %p441_p8, %p435_p5 }
  0x17   :  { %445 = shalt.err (!%p442_p9)
}
  0x18   :  { %31 = dma.hbm_to_vmem [thread:$0]  %s692_s0, 256, %s26_s12, [#allocation6], %s558_s14, %s558_s14, %s559_s15  }
  0x19   :  { %s560_s21 = smov [#allocation10]   ;;  %s561_s23 = smov [#allocation11]  }
  0x1a   :  { %s49_s22 = sshll.u32 %s560_s21, 4  ;;  %s61_s24 = sshll.u32 %s561_s23, 4  ;;  %s50_s22 = int_to_ptr.vmem [resolvable:$true] %s49_s22  ;;  %s62_s24 = int_to_ptr.vmem [resolvable:$true] %s61_s24 }
  0x1b   :  { %s454_s1 = scalar_lea.vmem %s50_s22, 512  ;;  %p459_p11 = scmp.lt.s32.totalorder %s50_s22, %s50_s22 }
  0x1c   :  { %p455_p10 = scmp.ne.s32.totalorder %s50_s22, %s454_s1  ;;  %p460_p12 = scmp.lt.s32.totalorder %s454_s1, %s454_s1 }
  0x1e   :  { %p461_p13 = por %p460_p12, %p459_p11 }
  0x20   :  { %p462_p0 = pnand %p461_p13, %p455_p10 }
  0x22   :  { %465 = shalt.err (!%p462_p0)
}
  0x23   :  { %55 = dma.hbm_to_vmem [thread:$0]  %s694_s2, 512, %s50_s22, [#allocation9], %s558_s14, %s558_s14, %s559_s15  }
  0x24   :  { %s474_s0 = scalar_lea.vmem %s62_s24, 512  ;;  %p479_p2 = scmp.lt.s32.totalorder %s62_s24, %s62_s24 }
  0x25   :  { %p475_p1 = scmp.ne.s32.totalorder %s62_s24, %s474_s0  ;;  %p480_p3 = scmp.lt.s32.totalorder %s474_s0, %s474_s0 }
  0x27   :  { %p481_p4 = por %p480_p3, %p479_p2 }
  0x29   :  { %p482_p5 = pnand %p481_p4, %p475_p1 }
  0x2b   :  { %485 = shalt.err (!%p482_p5)
}
  0x2c   :  { %67 = dma.hbm_to_vmem [thread:$0]  %s695_s3, 512, %s62_s24, [#allocation12], %s558_s14, %s558_s14, %s559_s15  }
  0x2d   :  { %546 = dma.done.wait [#allocation6], 256  }
  0x2e   :  { %547 = vsyncadd [#allocation6], 4294967040 }
  0x2f   :  { %548 = dma.done.wait [#allocation9], 1024  }
  0x30   :  { %549 = vsyncadd [#allocation9], 4294966272 }
  0x31   :  { %550 = dma.done.wait [#allocation12], 512  }
  0x32   :  { %551 = vsyncadd [#allocation12], 4294966784  ;;  %vm91_vm0 = vcmask 261120   ;;  %v562_v0 = vmov 0.0   ;;  %vm563_vm1 = vmmov 0   ;;  %v105_v1 = vld [vmem:[#allocation8 + $0x10] sm:$0xff] }
  0x33   :  { %371 = vmatprep.subr.bf16.mxu0 %v562_v0  ;;  %379 = vmatprep.subr.bf16.mxu1 %v562_v0  ;;  %92 = vst.msk [vmem:[#allocation2] sm:$0xff] %vm91_vm0, %v562_v0  ;;  %93 = vst.msk [vmem:[#allocation2 + $0x8] sm:$0xff] %vm91_vm0, %v562_v0  ;;  %v106_v2 = vld [vmem:[#allocation8 + $0x18] sm:$0xff]  ;;  %v162_v3 = vld [vmem:[#allocation10 + $0x10] sm:$0xff]  ;;  %s564_s10 = smov [#allocation13]   ;;  %s565_s12 = smov [#allocation14]  }
  0x34   :  { %94 = vst.msk [vmem:[#allocation3] sm:$0xff] %vm91_vm0, %v562_v0  ;;  %95 = vst.msk [vmem:[#allocation3 + $0x8] sm:$0xff] %vm91_vm0, %v562_v0  ;;  %375 = vmatprep.mubr.msk.bf16.mxu0 %vm563_vm1, %v562_v0  ;;  %383 = vmatprep.mubr.msk.bf16.mxu1 %vm563_vm1, %v562_v0  ;;  %v108_v4 = vpack.c.bf16 %v106_v2, %v105_v1  ;;  %v163_v5 = vld [vmem:[#allocation10 + $0x18] sm:$0xff]  ;;  %v103_v6 = vld [vmem:[#allocation8] sm:$0xff]  ;;  %s311_s11 = sshll.u32 %s564_s10, 4  ;;  %s323_s13 = sshll.u32 %s565_s12, 4  ;;  %s312_s11 = int_to_ptr.vmem [resolvable:$true] %s311_s11  ;;  %s324_s13 = int_to_ptr.vmem [resolvable:$true] %s323_s13 }
  0x35   :  { %96 = vst.msk [vmem:[#allocation4] sm:$0xff] %vm91_vm0, %v562_v0  ;;  %97 = vst.msk [vmem:[#allocation4 + $0x8] sm:$0xff] %vm91_vm0, %v562_v0  ;;  %v104_v7 = vld [vmem:[#allocation8 + $0x8] sm:$0xff]  ;;  %v165_v8 = vpack.c.bf16 %v163_v5, %v162_v3  ;;  %v160_v9 = vld [vmem:[#allocation10] sm:$0xff]  ;;  %s486_s16 = scalar_lea.vmem %s312_s11, 256  ;;  %p491_p7 = scmp.lt.s32.totalorder %s312_s11, %s312_s11 }
  0x36   :  { %v161_v10 = vld [vmem:[#allocation10 + $0x8] sm:$0xff]  ;;  %372 = vmatpush3.bf16.msra.mxu0 %v108_v4  ;;  %v107_v11 = vpack.c.bf16 %v104_v7, %v103_v6  ;;  %v98_v12 = vld [vmem:[#allocation5] sm:$0xff]  ;;  %v99_v13 = vld [vmem:[#allocation5 + $0x8] sm:$0xff]  ;;  %p487_p6 = scmp.ne.s32.totalorder %s312_s11, %s486_s16  ;;  %p492_p8 = scmp.lt.s32.totalorder %s486_s16, %s486_s16 }
  0x37   :  { %380 = vmatpush3.bf16.msra.mxu1 %v165_v8  ;;  %373 = vmatprep.subr.bf16.mxu0 %v562_v0  ;;  %v164_v14 = vpack.c.bf16 %v161_v10, %v160_v9  ;;  %v215_v15 = vld [vmem:[#allocation11 + $0x10] sm:$0xff]  ;;  %v216_v16 = vld [vmem:[#allocation11 + $0x18] sm:$0xff]  ;;  %v100_v17 = vpack.c.bf16 %v99_v13, %v98_v12  ;;  %v213_v19 = vld [vmem:[#allocation11] sm:$0xff] }
  0x38   :  { %381 = vmatprep.subr.bf16.mxu1 %v562_v0  ;;  %v218_v18 = vpack.c.bf16 %v216_v16, %v215_v15  ;;  %v214_v20 = vld [vmem:[#allocation11 + $0x8] sm:$0xff]  ;;  %v359_v40 = vld [vmem:[%s696_s4] ss:$0 sm:$0xff]  ;;  %p493_p9 = por %p492_p8, %p491_p7 }
  0x39   :  { %v217_v21 = vpack.c.bf16 %v214_v20, %v213_v19  ;;  %v360_v42 = vld [vmem:[%s697_s5] ss:$0 sm:$0xff] }
  0x3a   :  { %374 = vmatpush3.bf16.msra.mxu0 %v107_v11  ;;  %v101_v22 = vld [vmem:[#allocation2] sm:$0xff]  ;;  %v102_v29 = vld [vmem:[#allocation2 + $0x8] sm:$0xff]  ;;  %p494_p10 = pnand %p493_p9, %p487_p6 }
  0x3b   :  { %382 = vmatpush3.bf16.msra.mxu1 %v164_v14  ;;  %387 = vmatprep.subr.bf16.mxu0 %v562_v0  ;;  %v158_v23 = vld [vmem:[#allocation3] sm:$0xff]  ;;  %v159_v31 = vld [vmem:[#allocation3 + $0x8] sm:$0xff]  ;;  %v361_v56 = vld [vmem:[%s698_s6] ss:$0 sm:$0xff] }
  0x3c   :  { %v211_v37 = vld [vmem:[#allocation4] sm:$0xff]  ;;  %v212_v44 = vld [vmem:[#allocation4 + $0x8] sm:$0xff] }
  0x3d   :  { %376 = vmatmul.mubr.msk.bf16.vlgmr.msra.gmra.mxu0 %vm91_vm0, %v100_v17 }
  0x3e   :  { %388 = vmatpush3.bf16.msra.mxu0 %v218_v18  ;;  %384 = vmatmul.mubr.msk.bf16.vlgmr.msra.gmra.mxu1 %vm91_vm0, %v100_v17 }
  0x3f   :  { %389 = vmatprep.subr.bf16.mxu0 %v562_v0  ;;  %391 = vmatprep.mubr.msk.bf16.mxu0 %vm563_vm1, %v562_v0 }
  0x42   :  { %390 = vmatpush3.bf16.msra.mxu0 %v217_v21 }
  0x45   :  { %392 = vmatmul.mubr.msk.bf16.vlgmr.msra.gmra.mxu0 %vm91_vm0, %v100_v17 }
  0xfd   :  { %v147_v24 = vpop.f32.mrf.mxu0 }
  0xfe   :  { %v154_v25 = vadd.f32 %v147_v24, %v101_v22  ;;  %v200_v26 = vpop.f32.mrf.mxu1 }
  0xff   :  { %v377_v27 = vpop.f32.mrf.mxu0  ;;  %v207_v28 = vadd.f32 %v200_v26, %v158_v23 }
 0x100   :  { %156 = vst.msk [vmem:[#allocation2] sm:$0xff] %vm91_vm0, %v154_v25  ;;  %v385_v30 = vpop.f32.mrf.mxu1 }
 0x101   :  { %209 = vst.msk [vmem:[#allocation3] sm:$0xff] %vm91_vm0, %v207_v28  ;;  %v150_v32 = vpop.f32.mrf.mxu0 }
 0x102   :  { %v155_v33 = vadd.f32 %v150_v32, %v102_v29  ;;  %v203_v34 = vpop.f32.mrf.mxu1 }
 0x103   :  { %v378_v35 = vpop.f32.mrf.mxu0  ;;  %v208_v36 = vadd.f32 %v203_v34, %v159_v31 }
 0x104   :  { %157 = vst.msk [vmem:[#allocation2 + $0x8] sm:$0xff] %vm91_vm0, %v155_v33  ;;  %v386_v38 = vpop.f32.mrf.mxu1 }
 0x105   :  { %210 = vst.msk [vmem:[#allocation3 + $0x8] sm:$0xff] %vm91_vm0, %v208_v36  ;;  %v253_v39 = vpop.f32.mrf.mxu0 }
 0x106   :  { %v260_v41 = vadd.f32 %v253_v39, %v211_v37 }
 0x107   :  { %v393_v43 = vpop.f32.mrf.mxu0  ;;  %v267_v45 = vld [vmem:[#allocation2] sm:$0xff] }
 0x108   :  { %262 = vst.msk [vmem:[#allocation4] sm:$0xff] %vm91_vm0, %v260_v41  ;;  %v280_v46 = vld [vmem:[#allocation3] sm:$0xff]  ;;  %v276_v47 = vadd.f32 %v359_v40, %v267_v45 }
 0x109   :  { %v256_v48 = vpop.f32.mrf.mxu0  ;;  %v289_v49 = vadd.f32 %v360_v42, %v280_v46 }
 0x10a   :  { %v261_v50 = vadd.f32 %v256_v48, %v212_v44  ;;  %278 = vst.msk [vmem:[#allocation13] sm:$0xff] %vm91_vm0, %v276_v47 }
 0x10b   :  { %v394_v51 = vpop.f32.mrf.mxu0  ;;  %291 = vst.msk [vmem:[#allocation14] sm:$0xff] %vm91_vm0, %v289_v49  ;;  %v268_v52 = vld [vmem:[#allocation2 + $0x8] sm:$0xff] }
 0x10c   :  { %263 = vst.msk [vmem:[#allocation4 + $0x8] sm:$0xff] %vm91_vm0, %v261_v50  ;;  %v281_v53 = vld [vmem:[#allocation3 + $0x8] sm:$0xff]  ;;  %v277_v54 = vadd.f32 %v359_v40, %v268_v52 }
 0x10d   :  { %v290_v55 = vadd.f32 %v360_v42, %v281_v53 }
 0x10e   :  { %279 = vst.msk [vmem:[#allocation13 + $0x8] sm:$0xff] %vm91_vm0, %v277_v54 }
 0x10f   :  { %292 = vst.msk [vmem:[#allocation14 + $0x8] sm:$0xff] %vm91_vm0, %v290_v55 }
 0x110   :  { %497 = shalt.err (!%p494_p10)
}
 0x111   :  { %317 = dma.vmem_to_hbm [thread:$0]  %s312_s11, 256, %s699_s7, [#allocation7], %s558_s14, %s558_s14, %s559_s15   ;;  %v293_v57 = vld [vmem:[#allocation4] sm:$0xff] }
 0x112   :  { %s506_s6 = scalar_lea.vmem %s324_s13, 256  ;;  %p511_p12 = scmp.lt.s32.totalorder %s324_s13, %s324_s13 }
 0x113   :  { %p507_p11 = scmp.ne.s32.totalorder %s324_s13, %s506_s6  ;;  %p512_p13 = scmp.lt.s32.totalorder %s506_s6, %s506_s6 }
 0x115   :  { %p513_p0 = por %p512_p13, %p511_p12 }
 0x117   :  { %p514_p1 = pnand %p513_p0, %p507_p11 }
 0x119   :  { %517 = shalt.err (!%p514_p1)
}
 0x11a   :  { %329 = dma.vmem_to_hbm [thread:$0]  %s324_s13, 256, %s700_s8, [#allocation15], %s558_s14, %s558_s14, %s559_s15   ;;  %v302_v58 = vadd.f32 %v361_v56, %v293_v57  ;;  %v294_v59 = vld [vmem:[#allocation4 + $0x8] sm:$0xff] }
 0x11b   :  { %s566_s21 = smov [#allocation16]   ;;  %v303_v60 = vadd.f32 %v361_v56, %v294_v59 }
 0x11c   :  { %s335_s22 = sshll.u32 %s566_s21, 4  ;;  %304 = vst.msk [vmem:[#allocation16] sm:$0xff] %vm91_vm0, %v302_v58  ;;  %s336_s22 = int_to_ptr.vmem [resolvable:$true] %s335_s22 }
 0x11d   :  { %305 = vst.msk [vmem:[#allocation16 + $0x8] sm:$0xff] %vm91_vm0, %v303_v60  ;;  %s526_s7 = scalar_lea.vmem %s336_s22, 256  ;;  %p531_p3 = scmp.lt.s32.totalorder %s336_s22, %s336_s22 }
 0x11e   :  { %p527_p2 = scmp.ne.s32.totalorder %s336_s22, %s526_s7  ;;  %p532_p4 = scmp.lt.s32.totalorder %s526_s7, %s526_s7 }
 0x120   :  { %p533_p5 = por %p532_p4, %p531_p3 }
 0x122   :  { %p534_p6 = pnand %p533_p5, %p527_p2 }
 0x124   :  { %537 = shalt.err (!%p534_p6)
}
 0x125   :  { %341 = dma.vmem_to_hbm [thread:$0]  %s336_s22, 256, %s701_s9, [#allocation15], %s558_s14, %s558_s14, %s559_s15  }
 0x126   :  { %552 = dma.done.wait [#allocation7], 256  }
 0x127   :  { %553 = vsyncadd [#allocation7], 4294967040 }
 0x128   :  { %554 = dma.done.wait [#allocation15], 512  }
 0x129   :  { %555 = vsyncadd [#allocation15], 4294966784 }
 0x12a   :  { %351 = vsyncpa [#allocation6], 1 }
 0x12b   :  { %352 = vsyncpa [#allocation9], 1 }
 0x12c   :  { %353 = vsyncpa [#allocation12], 1 }
 0x12d   :  { %354 = vsyncpa [#allocation7], 1 }
 0x12e   :  { %355 = vsyncpa [#allocation15], 1 }

</bundles_post_ra>
